<compile_context>
chip_gen: v7x
topology: tpu7x:2x2x1
jax: 0.10.0
libtpu: 0.0.40
codegen_flags: <defaults>
</compile_context>

<pallas_src>
import functools

import jax
import jax.numpy as jnp
import numpy as np
from jax import lax
from jax.experimental import pallas as pl
from jax.experimental.pallas import tpu as pltpu


MATMUL_DTYPE = jnp.bfloat16        # MXU operand dtype (f32 accumulate). Use jnp.float32 for exactness.
VMEM_LIMIT = 32 * 1024 * 1024      # explicit budget: fits v5e/v6e/v7x scoped VMEM


def _round_up(x, m):
    return (x + m - 1) // m * m


# ---------------------------------------------------------------------------
# Fused kernel: one grid step == one batch row of the final [S+1+P, E] output.
# ---------------------------------------------------------------------------
def _fused_kernel(ids_ref, table_hbm, x_ref, w_ref, b_ref, cls_ref, out_ref, sem,
                  *, seq_len):
    """
    ids_ref   : SMEM (B*S,) int32  -- scalar-prefetched token ids
    table_hbm : HBM  (V, E)        -- embedding table, never staged whole
    x_ref     : VMEM (P, D_pad)    -- flattened patches for this batch (bf16)
    w_ref     : VMEM (E, D_pad)    -- conv weight, VMEM-resident across the grid
    b_ref     : VMEM (1, E) f32    -- conv bias
    cls_ref   : VMEM (1, E)        -- CLS token row
    out_ref   : VMEM (S+1+P, E)    -- output block for this batch
    sem       : shared DMA-completion semaphore
    """
    b = pl.program_id(0)
    n_patches = x_ref.shape[0]

    # 1) Start one row DMA per language token, straight into the output block
    #    rows [0, S) (no scratch slab, no VMEM->VMEM hop).  All copies share
    #    one semaphore and are waited on only after the matmul is issued.
    # TODO(synk): chunk this with pl.loop for very long language sequences.
    copies = []
    for r in range(seq_len):
        tok = ids_ref[b * seq_len + r]
        cp = pltpu.make_async_copy(
            table_hbm.at[pl.ds(tok, 1), :],
            out_ref.at[pl.ds(r, 1), :],
            sem,
        )
        cp.start()
        copies.append(cp)

    # 2) Patch projection on the MXU while the row DMAs are in flight.
    #    NT contraction (x last dim vs w last dim) consumes the conv weight in
    #    its stored [E, D] layout -- no wrapper-side transpose.
    acc = lax.dot_general(
        x_ref[...], w_ref[...],
        dimension_numbers=(((1,), (1,)), ((), ())),
        preferred_element_type=jnp.float32,
    )
    out_ref[pl.ds(seq_len + 1, n_patches), :] = (acc + b_ref[...]).astype(out_ref.dtype)

    # 3) CLS row sits between the language rows and the patch rows.
    out_ref[pl.ds(seq_len, 1), :] = cls_ref[...].astype(out_ref.dtype)

    # 4) Every embedding row must have landed before the block writes back.
    for cp in copies:
        cp.wait()


# ---------------------------------------------------------------------------
# Wrapper: WordPatchEmbedding.forward
# ---------------------------------------------------------------------------
@functools.partial(jax.jit, static_argnames=("patch_size",))
def word_patch_embedding(ids, images, table, conv_w, conv_b, cls_emb, patch_size):
    B, S = ids.shape
    V, E = table.shape
    _, C, H, W = images.shape
    ph, pw = patch_size
    Hp, Wp = H // ph, W // pw
    P = Hp * Wp
    D = C * ph * pw
    D_pad = _round_up(D, 128)            # lane-dense contraction dim
    S_tot = S + 1 + P
    out_dtype = table.dtype              # pin output dtype explicitly

    # Token ids -> SMEM scalar prefetch.  NOTE: out-of-range ids are clamped
    # (nn.Embedding would raise) so the row DMA always stays in bounds.
    ids_flat = jnp.clip(ids.astype(jnp.int32), 0, V - 1).reshape(B * S)

    # Conv2d(k=stride=patch) == matmul over flattened patches; (c, kh, kw)
    # flatten order matches the Conv2d weight [E, C, ph, pw].  bf16 cast before
    # the transpose halves the bytes of this layout pass.
    # TODO(synk): DMA (ph, W) strips straight from the NCHW images inside the
    # kernel to eliminate this wrapper-side transpose pass entirely.
    x = images.astype(MATMUL_DTYPE).reshape(B, C, Hp, ph, Wp, pw)
    x = x.transpose(0, 2, 4, 1, 3, 5).reshape(B, P, D)
    if D_pad != D:
        x = jnp.pad(x, ((0, 0), (0, 0), (0, D_pad - D)))

    w = conv_w.reshape(E, D).astype(MATMUL_DTYPE)          # stored layout, no .T
    if D_pad != D:
        w = jnp.pad(w, ((0, 0), (0, D_pad - D)))
    bias = conv_b.reshape(1, E).astype(jnp.float32)
    cls = cls_emb.reshape(1, E).astype(out_dtype)

    kernel = functools.partial(_fused_kernel, seq_len=S)

    return pl.pallas_call(
        kernel,
        out_shape=jax.ShapeDtypeStruct((B, S_tot, E), out_dtype),
        grid_spec=pltpu.PrefetchScalarGridSpec(
            num_scalar_prefetch=1,                               # ids -> SMEM
            grid=(B,),                                           # >=2 steps -> both v7x TCs
            in_specs=[
                pl.BlockSpec(memory_space=pl.ANY),                           # table (HBM)
                pl.BlockSpec((None, P, D_pad), lambda b, ids: (b, 0, 0)),    # patches
                pl.BlockSpec((E, D_pad), lambda b, ids: (0, 0)),             # weight: resident
                pl.BlockSpec((1, E), lambda b, ids: (0, 0)),                 # bias:   resident
                pl.BlockSpec((1, E), lambda b, ids: (0, 0)),                 # CLS:    resident
            ],
            out_specs=pl.BlockSpec((None, S_tot, E), lambda b, ids: (b, 0, 0)),
            scratch_shapes=[pltpu.SemaphoreType.DMA(())],        # shared row-DMA semaphore
        ),
        compiler_params=pltpu.CompilerParams(
            dimension_semantics=("parallel",),
            vmem_limit_bytes=VMEM_LIMIT,
        ),
    )(ids_flat, table, x, w, bias, cls)


if __name__ == "__main__":
    # Small deterministic shapes consistent with the module.
    B, S = 2, 8                    # batch, language seq length
    V, E = 64, 128                 # vocab size, emb size
    C, H, W = 3, 16, 16            # image channels / spatial (NCHW)
    patch = (8, 8)                 # kernel == stride
    P = (H // patch[0]) * (W // patch[1])

    key = jax.random.PRNGKey(0)
    k_ids, k_img, k_tab, k_w, k_b, k_cls = jax.random.split(key, 6)

    ids = jax.random.randint(k_ids, (B, S), 0, V, dtype=jnp.int32)
    images = jax.random.normal(k_img, (B, C, H, W), dtype=jnp.float32)

    # Deterministic synthetic parameters (shapes from the module __init__).
    table = 0.02 * jax.random.normal(k_tab, (V, E), dtype=jnp.float32)       # nn.Embedding
    conv_w = 0.02 * jax.random.normal(k_w, (E, C, patch[0], patch[1]), dtype=jnp.float32)
    conv_b = 0.01 * jax.random.normal(k_b, (E,), dtype=jnp.float32)
    cls_emb = 0.02 * jax.random.normal(k_cls, (1, 1, E), dtype=jnp.float32)  # PatchEmbedding cls

    out = word_patch_embedding(ids, images, table, conv_w, conv_b, cls_emb, patch)
    out = jax.block_until_ready(out)

    # Pure-JAX f32 reference of the PyTorch forward.
    l_ref = table[ids]                                                       # [B, S, E]
    patches_ref = images.reshape(B, C, H // patch[0], patch[0], W // patch[1], patch[1])
    patches_ref = patches_ref.transpose(0, 2, 4, 1, 3, 5).reshape(B, P, -1)
    proj_ref = jnp.einsum("bpd,ed->bpe", patches_ref, conv_w.reshape(E, -1)) + conv_b
    v_ref = jnp.concatenate(
        [jnp.broadcast_to(cls_emb, (B, 1, E)), proj_ref], axis=1)            # [B, 1+P, E]
    ref = jnp.concatenate([l_ref, v_ref], axis=1)                            # [B, S+1+P, E]

    assert out.shape == (B, S + 1 + P, E), out.shape
    # Language rows and CLS row are exact copies (pure DMA / f32 stores).
    np.testing.assert_array_equal(np.asarray(out[:, :S]), np.asarray(l_ref))
    np.testing.assert_array_equal(np.asarray(out[:, S]),
                                  np.asarray(jnp.broadcast_to(cls_emb, (B, 1, E))[:, 0]))
    # Patch projection uses bf16 operands / f32 accumulation -> loosened tolerance.
    np.testing.assert_allclose(np.asarray(out), np.asarray(ref), rtol=2e-2, atol=2e-2)
    print("KERNEL_OK")
</pallas_src>

<mosaic_0001>
module attributes {stable_mosaic.version = 11 : i64} {
  func.func @_fused_kernel(%arg0: i32, %arg1: memref<16xi32, #tpu.memory_space<smem>>, %arg2: memref<64x128xf32, #tpu.memory_space<any>>, %arg3: memref<1x4x256xbf16, #tpu.memory_space<vmem>>, %arg4: memref<128x256xbf16, #tpu.memory_space<vmem>>, %arg5: memref<1x128xf32, #tpu.memory_space<vmem>>, %arg6: memref<1x128xf32, #tpu.memory_space<vmem>>, %arg7: memref<1x13x128xf32, #tpu.memory_space<vmem>>, %arg8: memref<!tpu.dma_semaphore, #tpu.memory_space<semaphore_mem>>) attributes {dimension_semantics = [#tpu.dimension_semantics<parallel>], iteration_bounds = array<i64: 2>, scalar_prefetch = 1 : i64, scratch_operands = 1 : i64, tpu.core_type = #tpu.core_type<tc>, window_params = [{}, {transform_indices = @transform_1, window_bounds = array<i64: 1, 4, 256>}, {pipeline_mode = #tpu.pipeline_mode<synchronous>, transform_indices = @transform_2, window_bounds = array<i64: 128, 256>}, {pipeline_mode = #tpu.pipeline_mode<synchronous>, transform_indices = @transform_3, window_bounds = array<i64: 1, 128>}, {pipeline_mode = #tpu.pipeline_mode<synchronous>, transform_indices = @transform_4, window_bounds = array<i64: 1, 128>}, {transform_indices = @transform_5, window_bounds = array<i64: 1, 13, 128>}]} {
    %c8_i32 = arith.constant 8 : i32
    %0 = arith.muli %arg0, %c8_i32 : i32
    %c0_i32 = arith.constant 0 : i32
    %1 = arith.addi %0, %c0_i32 : i32
    %2 = arith.index_cast %1 : i32 to index
    %3 = memref.load %arg1[%2] : memref<16xi32, #tpu.memory_space<smem>>
    %c0_i32_0 = arith.constant 0 : i32
    %4 = tpu.memref_slice %arg2[%3, %c0_i32_0] : memref<64x128xf32, #tpu.memory_space<any>> -> memref<1x128xf32, #tpu.memory_space<any>>
    %c0_i32_1 = arith.constant 0 : i32
    %c0_i32_2 = arith.constant 0 : i32
    %c0_i32_3 = arith.constant 0 : i32
    %5 = tpu.memref_slice %arg7[%c0_i32_1, %c0_i32_2, %c0_i32_3] : memref<1x13x128xf32, #tpu.memory_space<vmem>> -> memref<1x1x128xf32, #tpu.memory_space<vmem>>
    %6 = tpu.memref_squeeze %5 : memref<1x1x128xf32, #tpu.memory_space<vmem>> -> memref<1x128xf32, #tpu.memory_space<vmem>>
    tpu.enqueue_dma source(%4 : memref<1x128xf32, #tpu.memory_space<any>>) target(%6 : memref<1x128xf32, #tpu.memory_space<vmem>>) target_semaphore(%arg8 : memref<!tpu.dma_semaphore, #tpu.memory_space<semaphore_mem>>)
    %c8_i32_4 = arith.constant 8 : i32
    %7 = arith.muli %arg0, %c8_i32_4 : i32
    %c1_i32 = arith.constant 1 : i32
    %8 = arith.addi %7, %c1_i32 : i32
    %9 = arith.index_cast %8 : i32 to index
    %10 = memref.load %arg1[%9] : memref<16xi32, #tpu.memory_space<smem>>
    %c0_i32_5 = arith.constant 0 : i32
    %11 = tpu.memref_slice %arg2[%10, %c0_i32_5] : memref<64x128xf32, #tpu.memory_space<any>> -> memref<1x128xf32, #tpu.memory_space<any>>
    %c0_i32_6 = arith.constant 0 : i32
    %c1_i32_7 = arith.constant 1 : i32
    %c0_i32_8 = arith.constant 0 : i32
    %12 = tpu.memref_slice %arg7[%c0_i32_6, %c1_i32_7, %c0_i32_8] : memref<1x13x128xf32, #tpu.memory_space<vmem>> -> memref<1x1x128xf32, #tpu.memory_space<vmem>>
    %13 = tpu.memref_squeeze %12 : memref<1x1x128xf32, #tpu.memory_space<vmem>> -> memref<1x128xf32, #tpu.memory_space<vmem>>
    tpu.enqueue_dma source(%11 : memref<1x128xf32, #tpu.memory_space<any>>) target(%13 : memref<1x128xf32, #tpu.memory_space<vmem>>) target_semaphore(%arg8 : memref<!tpu.dma_semaphore, #tpu.memory_space<semaphore_mem>>)
    %c8_i32_9 = arith.constant 8 : i32
    %14 = arith.muli %arg0, %c8_i32_9 : i32
    %c2_i32 = arith.constant 2 : i32
    %15 = arith.addi %14, %c2_i32 : i32
    %16 = arith.index_cast %15 : i32 to index
    %17 = memref.load %arg1[%16] : memref<16xi32, #tpu.memory_space<smem>>
    %c0_i32_10 = arith.constant 0 : i32
    %18 = tpu.memref_slice %arg2[%17, %c0_i32_10] : memref<64x128xf32, #tpu.memory_space<any>> -> memref<1x128xf32, #tpu.memory_space<any>>
    %c0_i32_11 = arith.constant 0 : i32
    %c2_i32_12 = arith.constant 2 : i32
    %c0_i32_13 = arith.constant 0 : i32
    %19 = tpu.memref_slice %arg7[%c0_i32_11, %c2_i32_12, %c0_i32_13] : memref<1x13x128xf32, #tpu.memory_space<vmem>> -> memref<1x1x128xf32, #tpu.memory_space<vmem>>
    %20 = tpu.memref_squeeze %19 : memref<1x1x128xf32, #tpu.memory_space<vmem>> -> memref<1x128xf32, #tpu.memory_space<vmem>>
    tpu.enqueue_dma source(%18 : memref<1x128xf32, #tpu.memory_space<any>>) target(%20 : memref<1x128xf32, #tpu.memory_space<vmem>>) target_semaphore(%arg8 : memref<!tpu.dma_semaphore, #tpu.memory_space<semaphore_mem>>)
    %c8_i32_14 = arith.constant 8 : i32
    %21 = arith.muli %arg0, %c8_i32_14 : i32
    %c3_i32 = arith.constant 3 : i32
    %22 = arith.addi %21, %c3_i32 : i32
    %23 = arith.index_cast %22 : i32 to index
    %24 = memref.load %arg1[%23] : memref<16xi32, #tpu.memory_space<smem>>
    %c0_i32_15 = arith.constant 0 : i32
    %25 = tpu.memref_slice %arg2[%24, %c0_i32_15] : memref<64x128xf32, #tpu.memory_space<any>> -> memref<1x128xf32, #tpu.memory_space<any>>
    %c0_i32_16 = arith.constant 0 : i32
    %c3_i32_17 = arith.constant 3 : i32
    %c0_i32_18 = arith.constant 0 : i32
    %26 = tpu.memref_slice %arg7[%c0_i32_16, %c3_i32_17, %c0_i32_18] : memref<1x13x128xf32, #tpu.memory_space<vmem>> -> memref<1x1x128xf32, #tpu.memory_space<vmem>>
    %27 = tpu.memref_squeeze %26 : memref<1x1x128xf32, #tpu.memory_space<vmem>> -> memref<1x128xf32, #tpu.memory_space<vmem>>
    tpu.enqueue_dma source(%25 : memref<1x128xf32, #tpu.memory_space<any>>) target(%27 : memref<1x128xf32, #tpu.memory_space<vmem>>) target_semaphore(%arg8 : memref<!tpu.dma_semaphore, #tpu.memory_space<semaphore_mem>>)
    %c8_i32_19 = arith.constant 8 : i32
    %28 = arith.muli %arg0, %c8_i32_19 : i32
    %c4_i32 = arith.constant 4 : i32
    %29 = arith.addi %28, %c4_i32 : i32
    %30 = arith.index_cast %29 : i32 to index
    %31 = memref.load %arg1[%30] : memref<16xi32, #tpu.memory_space<smem>>
    %c0_i32_20 = arith.constant 0 : i32
    %32 = tpu.memref_slice %arg2[%31, %c0_i32_20] : memref<64x128xf32, #tpu.memory_space<any>> -> memref<1x128xf32, #tpu.memory_space<any>>
    %c0_i32_21 = arith.constant 0 : i32
    %c4_i32_22 = arith.constant 4 : i32
    %c0_i32_23 = arith.constant 0 : i32
    %33 = tpu.memref_slice %arg7[%c0_i32_21, %c4_i32_22, %c0_i32_23] : memref<1x13x128xf32, #tpu.memory_space<vmem>> -> memref<1x1x128xf32, #tpu.memory_space<vmem>>
    %34 = tpu.memref_squeeze %33 : memref<1x1x128xf32, #tpu.memory_space<vmem>> -> memref<1x128xf32, #tpu.memory_space<vmem>>
    tpu.enqueue_dma source(%32 : memref<1x128xf32, #tpu.memory_space<any>>) target(%34 : memref<1x128xf32, #tpu.memory_space<vmem>>) target_semaphore(%arg8 : memref<!tpu.dma_semaphore, #tpu.memory_space<semaphore_mem>>)
    %c8_i32_24 = arith.constant 8 : i32
    %35 = arith.muli %arg0, %c8_i32_24 : i32
    %c5_i32 = arith.constant 5 : i32
    %36 = arith.addi %35, %c5_i32 : i32
    %37 = arith.index_cast %36 : i32 to index
    %38 = memref.load %arg1[%37] : memref<16xi32, #tpu.memory_space<smem>>
    %c0_i32_25 = arith.constant 0 : i32
    %39 = tpu.memref_slice %arg2[%38, %c0_i32_25] : memref<64x128xf32, #tpu.memory_space<any>> -> memref<1x128xf32, #tpu.memory_space<any>>
    %c0_i32_26 = arith.constant 0 : i32
    %c5_i32_27 = arith.constant 5 : i32
    %c0_i32_28 = arith.constant 0 : i32
    %40 = tpu.memref_slice %arg7[%c0_i32_26, %c5_i32_27, %c0_i32_28] : memref<1x13x128xf32, #tpu.memory_space<vmem>> -> memref<1x1x128xf32, #tpu.memory_space<vmem>>
    %41 = tpu.memref_squeeze %40 : memref<1x1x128xf32, #tpu.memory_space<vmem>> -> memref<1x128xf32, #tpu.memory_space<vmem>>
    tpu.enqueue_dma source(%39 : memref<1x128xf32, #tpu.memory_space<any>>) target(%41 : memref<1x128xf32, #tpu.memory_space<vmem>>) target_semaphore(%arg8 : memref<!tpu.dma_semaphore, #tpu.memory_space<semaphore_mem>>)
    %c8_i32_29 = arith.constant 8 : i32
    %42 = arith.muli %arg0, %c8_i32_29 : i32
    %c6_i32 = arith.constant 6 : i32
    %43 = arith.addi %42, %c6_i32 : i32
    %44 = arith.index_cast %43 : i32 to index
    %45 = memref.load %arg1[%44] : memref<16xi32, #tpu.memory_space<smem>>
    %c0_i32_30 = arith.constant 0 : i32
    %46 = tpu.memref_slice %arg2[%45, %c0_i32_30] : memref<64x128xf32, #tpu.memory_space<any>> -> memref<1x128xf32, #tpu.memory_space<any>>
    %c0_i32_31 = arith.constant 0 : i32
    %c6_i32_32 = arith.constant 6 : i32
    %c0_i32_33 = arith.constant 0 : i32
    %47 = tpu.memref_slice %arg7[%c0_i32_31, %c6_i32_32, %c0_i32_33] : memref<1x13x128xf32, #tpu.memory_space<vmem>> -> memref<1x1x128xf32, #tpu.memory_space<vmem>>
    %48 = tpu.memref_squeeze %47 : memref<1x1x128xf32, #tpu.memory_space<vmem>> -> memref<1x128xf32, #tpu.memory_space<vmem>>
    tpu.enqueue_dma source(%46 : memref<1x128xf32, #tpu.memory_space<any>>) target(%48 : memref<1x128xf32, #tpu.memory_space<vmem>>) target_semaphore(%arg8 : memref<!tpu.dma_semaphore, #tpu.memory_space<semaphore_mem>>)
    %c8_i32_34 = arith.constant 8 : i32
    %49 = arith.muli %arg0, %c8_i32_34 : i32
    %c7_i32 = arith.constant 7 : i32
    %50 = arith.addi %49, %c7_i32 : i32
    %51 = arith.index_cast %50 : i32 to index
    %52 = memref.load %arg1[%51] : memref<16xi32, #tpu.memory_space<smem>>
    %c0_i32_35 = arith.constant 0 : i32
    %53 = tpu.memref_slice %arg2[%52, %c0_i32_35] : memref<64x128xf32, #tpu.memory_space<any>> -> memref<1x128xf32, #tpu.memory_space<any>>
    %c0_i32_36 = arith.constant 0 : i32
    %c7_i32_37 = arith.constant 7 : i32
    %c0_i32_38 = arith.constant 0 : i32
    %54 = tpu.memref_slice %arg7[%c0_i32_36, %c7_i32_37, %c0_i32_38] : memref<1x13x128xf32, #tpu.memory_space<vmem>> -> memref<1x1x128xf32, #tpu.memory_space<vmem>>
    %55 = tpu.memref_squeeze %54 : memref<1x1x128xf32, #tpu.memory_space<vmem>> -> memref<1x128xf32, #tpu.memory_space<vmem>>
    tpu.enqueue_dma source(%53 : memref<1x128xf32, #tpu.memory_space<any>>) target(%55 : memref<1x128xf32, #tpu.memory_space<vmem>>) target_semaphore(%arg8 : memref<!tpu.dma_semaphore, #tpu.memory_space<semaphore_mem>>)
    %c0 = arith.constant 0 : index
    %c0_39 = arith.constant 0 : index
    %c0_40 = arith.constant 0 : index
    %56 = vector.load %arg3[%c0, %c0_39, %c0_40] : memref<1x4x256xbf16, #tpu.memory_space<vmem>>, vector<1x4x256xbf16>
    %57 = vector.shape_cast %56 : vector<1x4x256xbf16> to vector<4x256xbf16>
    %c0_41 = arith.constant 0 : index
    %c0_42 = arith.constant 0 : index
    %58 = vector.load %arg4[%c0_41, %c0_42] : memref<128x256xbf16, #tpu.memory_space<vmem>>, vector<128x256xbf16>
    %cst = arith.constant dense<0.000000e+00> : vector<4x128xf32>
    %59 = tpu.matmul %57, %58, %cst {dimension_numbers = #tpu.dot_dimension_numbers<[1], [1], [0], [0], [0, 0, 1, 0], [], []>} : vector<4x256xbf16>, vector<128x256xbf16>, vector<4x128xf32> -> vector<4x128xf32>
    %c0_43 = arith.constant 0 : index
    %c0_44 = arith.constant 0 : index
    %60 = vector.load %arg5[%c0_43, %c0_44] : memref<1x128xf32, #tpu.memory_space<vmem>>, vector<1x128xf32>
    %61 = vector.broadcast %60 : vector<1x128xf32> to vector<4x128xf32>
    %62 = arith.addf %59, %61 : vector<4x128xf32>
    %c0_45 = arith.constant 0 : index
    %c9 = arith.constant 9 : index
    %c0_46 = arith.constant 0 : index
    %63 = vector.load %arg7[%c0_45, %c9, %c0_46] : memref<1x13x128xf32, #tpu.memory_space<vmem>>, vector<1x4x128xf32>
    %64 = vector.shape_cast %63 : vector<1x4x128xf32> to vector<4x128xf32>
    %65 = vector.shape_cast %62 : vector<4x128xf32> to vector<1x4x128xf32>
    tpu.vector_store %arg7[%c0_45, %c9, %c0_46], %65 {strides = array<i32>} : memref<1x13x128xf32, #tpu.memory_space<vmem>>, vector<1x4x128xf32>,
    %c0_47 = arith.constant 0 : index
    %c0_48 = arith.constant 0 : index
    %66 = vector.load %arg6[%c0_47, %c0_48] : memref<1x128xf32, #tpu.memory_space<vmem>>, vector<1x128xf32>
    %c0_49 = arith.constant 0 : index
    %c8 = arith.constant 8 : index
    %c0_50 = arith.constant 0 : index
    %67 = vector.load %arg7[%c0_49, %c8, %c0_50] : memref<1x13x128xf32, #tpu.memory_space<vmem>>, vector<1x1x128xf32>
    %68 = vector.shape_cast %67 : vector<1x1x128xf32> to vector<1x128xf32>
    %69 = vector.shape_cast %66 : vector<1x128xf32> to vector<1x1x128xf32>
    tpu.vector_store %arg7[%c0_49, %c8, %c0_50], %69 {strides = array<i32>} : memref<1x13x128xf32, #tpu.memory_space<vmem>>, vector<1x1x128xf32>,
    %c0_i32_51 = arith.constant 0 : i32
    %70 = tpu.memref_slice %arg2[%3, %c0_i32_51] : memref<64x128xf32, #tpu.memory_space<any>> -> memref<1x128xf32, #tpu.memory_space<any>>
    %c0_i32_52 = arith.constant 0 : i32
    %c0_i32_53 = arith.constant 0 : i32
    %c0_i32_54 = arith.constant 0 : i32
    %71 = tpu.memref_slice %arg7[%c0_i32_52, %c0_i32_53, %c0_i32_54] : memref<1x13x128xf32, #tpu.memory_space<vmem>> -> memref<1x1x128xf32, #tpu.memory_space<vmem>>
    %72 = tpu.memref_squeeze %71 : memref<1x1x128xf32, #tpu.memory_space<vmem>> -> memref<1x128xf32, #tpu.memory_space<vmem>>
    tpu.wait_dma2 semaphore(%arg8 : memref<!tpu.dma_semaphore, #tpu.memory_space<semaphore_mem>>) src(%70 : memref<1x128xf32, #tpu.memory_space<any>>) dst(%72 : memref<1x128xf32, #tpu.memory_space<vmem>>)
    %c0_i32_55 = arith.constant 0 : i32
    %73 = tpu.memref_slice %arg2[%10, %c0_i32_55] : memref<64x128xf32, #tpu.memory_space<any>> -> memref<1x128xf32, #tpu.memory_space<any>>
    %c0_i32_56 = arith.constant 0 : i32
    %c1_i32_57 = arith.constant 1 : i32
    %c0_i32_58 = arith.constant 0 : i32
    %74 = tpu.memref_slice %arg7[%c0_i32_56, %c1_i32_57, %c0_i32_58] : memref<1x13x128xf32, #tpu.memory_space<vmem>> -> memref<1x1x128xf32, #tpu.memory_space<vmem>>
    %75 = tpu.memref_squeeze %74 : memref<1x1x128xf32, #tpu.memory_space<vmem>> -> memref<1x128xf32, #tpu.memory_space<vmem>>
    tpu.wait_dma2 semaphore(%arg8 : memref<!tpu.dma_semaphore, #tpu.memory_space<semaphore_mem>>) src(%73 : memref<1x128xf32, #tpu.memory_space<any>>) dst(%75 : memref<1x128xf32, #tpu.memory_space<vmem>>)
    %c0_i32_59 = arith.constant 0 : i32
    %76 = tpu.memref_slice %arg2[%17, %c0_i32_59] : memref<64x128xf32, #tpu.memory_space<any>> -> memref<1x128xf32, #tpu.memory_space<any>>
    %c0_i32_60 = arith.constant 0 : i32
    %c2_i32_61 = arith.constant 2 : i32
    %c0_i32_62 = arith.constant 0 : i32
    %77 = tpu.memref_slice %arg7[%c0_i32_60, %c2_i32_61, %c0_i32_62] : memref<1x13x128xf32, #tpu.memory_space<vmem>> -> memref<1x1x128xf32, #tpu.memory_space<vmem>>
    %78 = tpu.memref_squeeze %77 : memref<1x1x128xf32, #tpu.memory_space<vmem>> -> memref<1x128xf32, #tpu.memory_space<vmem>>
    tpu.wait_dma2 semaphore(%arg8 : memref<!tpu.dma_semaphore, #tpu.memory_space<semaphore_mem>>) src(%76 : memref<1x128xf32, #tpu.memory_space<any>>) dst(%78 : memref<1x128xf32, #tpu.memory_space<vmem>>)
    %c0_i32_63 = arith.constant 0 : i32
    %79 = tpu.memref_slice %arg2[%24, %c0_i32_63] : memref<64x128xf32, #tpu.memory_space<any>> -> memref<1x128xf32, #tpu.memory_space<any>>
    %c0_i32_64 = arith.constant 0 : i32
    %c3_i32_65 = arith.constant 3 : i32
    %c0_i32_66 = arith.constant 0 : i32
    %80 = tpu.memref_slice %arg7[%c0_i32_64, %c3_i32_65, %c0_i32_66] : memref<1x13x128xf32, #tpu.memory_space<vmem>> -> memref<1x1x128xf32, #tpu.memory_space<vmem>>
    %81 = tpu.memref_squeeze %80 : memref<1x1x128xf32, #tpu.memory_space<vmem>> -> memref<1x128xf32, #tpu.memory_space<vmem>>
    tpu.wait_dma2 semaphore(%arg8 : memref<!tpu.dma_semaphore, #tpu.memory_space<semaphore_mem>>) src(%79 : memref<1x128xf32, #tpu.memory_space<any>>) dst(%81 : memref<1x128xf32, #tpu.memory_space<vmem>>)
    %c0_i32_67 = arith.constant 0 : i32
    %82 = tpu.memref_slice %arg2[%31, %c0_i32_67] : memref<64x128xf32, #tpu.memory_space<any>> -> memref<1x128xf32, #tpu.memory_space<any>>
    %c0_i32_68 = arith.constant 0 : i32
    %c4_i32_69 = arith.constant 4 : i32
    %c0_i32_70 = arith.constant 0 : i32
    %83 = tpu.memref_slice %arg7[%c0_i32_68, %c4_i32_69, %c0_i32_70] : memref<1x13x128xf32, #tpu.memory_space<vmem>> -> memref<1x1x128xf32, #tpu.memory_space<vmem>>
    %84 = tpu.memref_squeeze %83 : memref<1x1x128xf32, #tpu.memory_space<vmem>> -> memref<1x128xf32, #tpu.memory_space<vmem>>
    tpu.wait_dma2 semaphore(%arg8 : memref<!tpu.dma_semaphore, #tpu.memory_space<semaphore_mem>>) src(%82 : memref<1x128xf32, #tpu.memory_space<any>>) dst(%84 : memref<1x128xf32, #tpu.memory_space<vmem>>)
    %c0_i32_71 = arith.constant 0 : i32
    %85 = tpu.memref_slice %arg2[%38, %c0_i32_71] : memref<64x128xf32, #tpu.memory_space<any>> -> memref<1x128xf32, #tpu.memory_space<any>>
    %c0_i32_72 = arith.constant 0 : i32
    %c5_i32_73 = arith.constant 5 : i32
    %c0_i32_74 = arith.constant 0 : i32
    %86 = tpu.memref_slice %arg7[%c0_i32_72, %c5_i32_73, %c0_i32_74] : memref<1x13x128xf32, #tpu.memory_space<vmem>> -> memref<1x1x128xf32, #tpu.memory_space<vmem>>
    %87 = tpu.memref_squeeze %86 : memref<1x1x128xf32, #tpu.memory_space<vmem>> -> memref<1x128xf32, #tpu.memory_space<vmem>>
    tpu.wait_dma2 semaphore(%arg8 : memref<!tpu.dma_semaphore, #tpu.memory_space<semaphore_mem>>) src(%85 : memref<1x128xf32, #tpu.memory_space<any>>) dst(%87 : memref<1x128xf32, #tpu.memory_space<vmem>>)
    %c0_i32_75 = arith.constant 0 : i32
    %88 = tpu.memref_slice %arg2[%45, %c0_i32_75] : memref<64x128xf32, #tpu.memory_space<any>> -> memref<1x128xf32, #tpu.memory_space<any>>
    %c0_i32_76 = arith.constant 0 : i32
    %c6_i32_77 = arith.constant 6 : i32
    %c0_i32_78 = arith.constant 0 : i32
    %89 = tpu.memref_slice %arg7[%c0_i32_76, %c6_i32_77, %c0_i32_78] : memref<1x13x128xf32, #tpu.memory_space<vmem>> -> memref<1x1x128xf32, #tpu.memory_space<vmem>>
    %90 = tpu.memref_squeeze %89 : memref<1x1x128xf32, #tpu.memory_space<vmem>> -> memref<1x128xf32, #tpu.memory_space<vmem>>
    tpu.wait_dma2 semaphore(%arg8 : memref<!tpu.dma_semaphore, #tpu.memory_space<semaphore_mem>>) src(%88 : memref<1x128xf32, #tpu.memory_space<any>>) dst(%90 : memref<1x128xf32, #tpu.memory_space<vmem>>)
    %c0_i32_79 = arith.constant 0 : i32
    %91 = tpu.memref_slice %arg2[%52, %c0_i32_79] : memref<64x128xf32, #tpu.memory_space<any>> -> memref<1x128xf32, #tpu.memory_space<any>>
    %c0_i32_80 = arith.constant 0 : i32
    %c7_i32_81 = arith.constant 7 : i32
    %c0_i32_82 = arith.constant 0 : i32
    %92 = tpu.memref_slice %arg7[%c0_i32_80, %c7_i32_81, %c0_i32_82] : memref<1x13x128xf32, #tpu.memory_space<vmem>> -> memref<1x1x128xf32, #tpu.memory_space<vmem>>
    %93 = tpu.memref_squeeze %92 : memref<1x1x128xf32, #tpu.memory_space<vmem>> -> memref<1x128xf32, #tpu.memory_space<vmem>>
    tpu.wait_dma2 semaphore(%arg8 : memref<!tpu.dma_semaphore, #tpu.memory_space<semaphore_mem>>) src(%91 : memref<1x128xf32, #tpu.memory_space<any>>) dst(%93 : memref<1x128xf32, #tpu.memory_space<vmem>>)
    return
  }
  func.func @transform_1(%arg0: i32, %arg1: memref<16xi32, #tpu.memory_space<smem>>) -> (i32, i32, i32) {
    %c0_i32 = arith.constant 0 : i32
    %c0_i32_0 = arith.constant 0 : i32
    %c0_i32_1 = arith.constant 0 : i32
    return %arg0, %c0_i32, %c0_i32_0 : i32, i32, i32
  }
  func.func @transform_2(%arg0: i32, %arg1: memref<16xi32, #tpu.memory_space<smem>>) -> (i32, i32) {
    %c0_i32 = arith.constant 0 : i32
    %c0_i32_0 = arith.constant 0 : i32
    %c0_i32_1 = arith.constant 0 : i32
    return %c0_i32, %c0_i32_0 : i32, i32
  }
  func.func @transform_3(%arg0: i32, %arg1: memref<16xi32, #tpu.memory_space<smem>>) -> (i32, i32) {
    %c0_i32 = arith.constant 0 : i32
    %c0_i32_0 = arith.constant 0 : i32
    %c0_i32_1 = arith.constant 0 : i32
    return %c0_i32, %c0_i32_0 : i32, i32
  }
  func.func @transform_4(%arg0: i32, %arg1: memref<16xi32, #tpu.memory_space<smem>>) -> (i32, i32) {
    %c0_i32 = arith.constant 0 : i32
    %c0_i32_0 = arith.constant 0 : i32
    %c0_i32_1 = arith.constant 0 : i32
    return %c0_i32, %c0_i32_0 : i32, i32
  }
  func.func @transform_5(%arg0: i32, %arg1: memref<16xi32, #tpu.memory_space<smem>>) -> (i32, i32, i32) {
    %c0_i32 = arith.constant 0 : i32
    %c0_i32_0 = arith.constant 0 : i32
    %c0_i32_1 = arith.constant 0 : i32
    return %arg0, %c0_i32, %c0_i32_0 : i32, i32, i32
  }
}

</mosaic_0001>

<bundles_post_ra>
// kernel: word_patch_embedding.1
= control target key start
LH: loop header
LB: loop body
LE: loop exit
PB: predicated region body
PF: predicated region fallthrough
CT: control target
= control target key end

     0   :  { %s1184_s0 = inlined_call_operand.vmem [shape: s32[16], index: 0, kind: input, shape index: {}]   ;;  %s1185_s1 = inlined_call_operand.vmem [shape: f32[64,128], index: 1, kind: input, shape index: {}]   ;;  %s1186_s2 = inlined_call_operand.vmem [shape: bf16[2,4,256], index: 2, kind: input, shape index: {}]   ;;  %s1187_s3 = inlined_call_operand.vmem [shape: bf16[128,256], index: 3, kind: input, shape index: {}]   ;;  %s1188_s4 = inlined_call_operand.vmem [shape: f32[1,128], index: 4, kind: input, shape index: {}]   ;;  %s1189_s5 = inlined_call_operand.vmem [shape: f32[1,128], index: 5, kind: input, shape index: {}]   ;;  %s1190_s6 = inlined_call_operand.vmem [shape: f32[2,13,128], index: 6, kind: output, shape index: {}]  }
   0x1   :  { %s11_s23 = sshll.u32 %s1184_s0, 4  ;;  %s12_s23 = int_to_ptr.vmem [resolvable:$true] %s11_s23 }
   0x2   :  { %s1001_s24 = scalar_lea.vmem %s12_s23, 16  ;;  %p1006_p1 = scmp.lt.s32.totalorder %s12_s23, %s12_s23 }
   0x3   :  { %p1002_p0 = scmp.ne.s32.totalorder %s12_s23, %s1001_s24  ;;  %p1007_p2 = scmp.lt.s32.totalorder %s1001_s24, %s1001_s24 }
   0x5   :  { %p1008_p3 = por %p1007_p2, %p1006_p1 }
   0x7   :  { %p1009_p4 = pnand %p1008_p3, %p1002_p0 }
   0x9   :  { %1012 = shalt.err (!%p1009_p4)  }
   0xa   :  { %s1025_s25 = smov [#allocation4]  }
   0xb   :  { %14 = dma.vmem_to_smem %s12_s23, 16, %s1025_s25, [#allocation3] }
   0xc   :  { %1017 = dma.done.wait [#allocation3], 16 }
   0xd   :  { %1018 = vsyncadd [#allocation3], 4294967280 }
   0xe   :  { %16 = sfence }
   0xf   :  { %s1064_s26 = smov 0  }
  0x10 LB: > { %s921_s0 = sadd.s32 4294967295, %s1023_s26   ;;  %p925_p5 = scmp.ge.s32.totalorder %s1023_s26, 1  ;;  %s1023_s26 = sphi %s1064_s26, %s22_s26  }
  0x11   : > { %p170_p6 = scmp.lt.s32.totalorder %s1023_s26, 3 }
  0x13   : > { %p171_p7 = pnand %p925_p5, %p170_p6 }
  0x14   : > { %p196_p8 = scmp.lt.s32.totalorder (!%p171_p7), %s921_s0, 1  ;;  %s1072_s27 = sshll.u32 (!%p171_p7), %s921_s0, 3 }
  0x15   : > { %174 = sbr.rel (%p171_p7) target bundleno = 384 (0x180), region = 36  ;;  %s208_s28 = sld [smem:[#allocation4 + %s1072_s27]] (!%p171_p7) }
  0x1b   : > { %s209_s15 = scalar_lea.vmem (!%p171_p7), %s1185_s1, %s208_s28 }
  0x1c   : > { %s1192_s0 = smov (!%p196_p8, %s921_s0), 1  ;;  %v227_v0 = vld [vmem:[%s209_s15] sm:$0x1] }
  0x1d   : > { %s966_s29 = sshll.u32 %s1192_s0, 2  ;;  %s967_s30 = sshll.u32 %s1192_s0, 4 }
  0x1e   : > { %s1078_s9 = scalar_lea.vmem %s1186_s2, %s966_s29  ;;  %s1083_s12 = scalar_lea.vmem %s1190_s6, %s967_s30 }
  0x1f   : > { %228 = vst [vmem:[%s1083_s12] sm:$0x1] %v227_v0 }
  0x20   : > { %253 = vsyncadd [#allocation2], 16  ;;  %s254_s16 = sadd.s32 1, %s1072_s27 }
  0x21   : > { %s255_s17 = sld [smem:[#allocation4 + %s254_s16]] }
  0x27   : > { %s256_s20 = scalar_lea.vmem %s1185_s1, %s255_s17 }
  0x28   : > { %v275_v1 = vld [vmem:[%s256_s20] sm:$0x1] }
  0x29   : > { %932 = vst [vmem:[%s1083_s12 + $0x1] sm:$0x1] %v275_v1 }
  0x2a   : > { %301 = vsyncadd [#allocation2], 16  ;;  %s302_s21 = sadd.s32 2, %s1072_s27 }
  0x2b   : > { %s303_s22 = sld [smem:[#allocation4 + %s302_s21]] }
  0x31   : > { %s304_s25 = scalar_lea.vmem %s1185_s1, %s303_s22 }
  0x32   : > { %v323_v2 = vld [vmem:[%s304_s25] sm:$0x1] }
  0x33   : > { %934 = vst [vmem:[%s1083_s12 + $0x2] sm:$0x1] %v323_v2 }
  0x34   : > { %349 = vsyncadd [#allocation2], 16  ;;  %s350_s0 = sadd.s32 3, %s1072_s27 }
  0x35   : > { %s351_s28 = sld [smem:[#allocation4 + %s350_s0]] }
  0x3b   : > { %s352_s7 = scalar_lea.vmem %s1185_s1, %s351_s28 }
  0x3c   : > { %v371_v3 = vld [vmem:[%s352_s7] sm:$0x1] }
  0x3d   : > { %936 = vst [vmem:[%s1083_s12 + $0x3] sm:$0x1] %v371_v3 }
  0x3e   : > { %397 = vsyncadd [#allocation2], 16  ;;  %s398_s8 = sadd.s32 4, %s1072_s27 }
  0x3f   : > { %s399_s10 = sld [smem:[#allocation4 + %s398_s8]] }
  0x45   : > { %s400_s14 = scalar_lea.vmem %s1185_s1, %s399_s10 }
  0x46   : > { %v419_v4 = vld [vmem:[%s400_s14] sm:$0x1] }
  0x47   : > { %938 = vst [vmem:[%s1083_s12 + $0x4] sm:$0x1] %v419_v4 }
  0x48   : > { %445 = vsyncadd [#allocation2], 16  ;;  %s446_s15 = sadd.s32 5, %s1072_s27 }
  0x49   : > { %s447_s16 = sld [smem:[#allocation4 + %s446_s15]] }
  0x4f   : > { %s448_s19 = scalar_lea.vmem %s1185_s1, %s447_s16 }
  0x50   : > { %v467_v5 = vld [vmem:[%s448_s19] sm:$0x1] }
  0x51   : > { %940 = vst [vmem:[%s1083_s12 + $0x5] sm:$0x1] %v467_v5 }
  0x52   : > { %493 = vsyncadd [#allocation2], 16  ;;  %s494_s20 = sadd.s32 6, %s1072_s27 }
  0x53   : > { %s495_s21 = sld [smem:[#allocation4 + %s494_s20]] }
  0x59   : > { %s496_s24 = scalar_lea.vmem %s1185_s1, %s495_s21 }
  0x5a   : > { %v515_v6 = vld [vmem:[%s496_s24] sm:$0x1] }
  0x5b   : > { %942 = vst [vmem:[%s1083_s12 + $0x6] sm:$0x1] %v515_v6 }
  0x5c   : > { %541 = vsyncadd [#allocation2], 16  ;;  %s542_s25 = sadd.s32 7, %s1072_s27 }
  0x5d   : > { %s543_s0 = sld [smem:[#allocation4 + %s542_s25]] }
  0x63   : > { %s544_s30 = scalar_lea.vmem %s1185_s1, %s543_s0 }
  0x64   : > { %v563_v7 = vld [vmem:[%s544_s30] sm:$0x1] }
  0x65   : > { %944 = vst [vmem:[%s1083_s12 + $0x7] sm:$0x1] %v563_v7 }
  0x66   : > { %589 = vsyncadd [#allocation2], 16  ;;  %v977_v8 = vld [vmem:[%s1187_s3 + $0x4] ss:$8 sps:$4 sm:$0xff]   ;;  %v979_v9 = vld [vmem:[%s1187_s3] ss:$8 sps:$4 sm:$0xff]  }
  0x67   : > { %v980_v10 = vld [vmem:[%s1187_s3 + $0x14] ss:$8 sps:$4 sm:$0xff]   ;;  %705 = vmatprep.subr.bf16.mxu0 %v977_v8  ;;  %v982_v11 = vld [vmem:[%s1187_s3 + $0x10] ss:$8 sps:$4 sm:$0xff]   ;;  %v983_v12 = vld [vmem:[%s1187_s3 + $0x24] ss:$8 sps:$4 sm:$0xff]  }
  0x68   : > { %706 = vmatpush1.bf16.xpose.msra.mxu0 %v979_v9  ;;  %v946_v13 = vld.sshfl [vmem:[%s1078_s9] sm:$0x33 pattern:$0x76325410]  ;;  %v986_v16 = vld [vmem:[%s1187_s3 + $0x34] ss:$8 sps:$4 sm:$0xff]  }
  0x69   : > { %707 = vmatprep.subr.bf16.mxu0 %v980_v10  ;;  %v622_v14 = vcombine.high %v946_v13, %v946_v13  ;;  %v985_v15 = vld [vmem:[%s1187_s3 + $0x20] ss:$8 sps:$4 sm:$0xff]   ;;  %v988_v17 = vld [vmem:[%s1187_s3 + $0x30] ss:$8 sps:$4 sm:$0xff]   ;;  %v989_v18 = vld [vmem:[%s1187_s3 + $0x44] ss:$8 sps:$4 sm:$0xff]  }
  0x6a   : > { %v991_v19 = vld [vmem:[%s1187_s3 + $0x40] ss:$8 sps:$4 sm:$0xff]   ;;  %v992_v20 = vld [vmem:[%s1187_s3 + $0x54] ss:$8 sps:$4 sm:$0xff]   ;;  %v994_v21 = vld [vmem:[%s1187_s3 + $0x50] ss:$8 sps:$4 sm:$0xff]  }
  0x6b   : > { %737 = vmatprep.mubr.bf16.mxu0 %v622_v14  ;;  %v995_v22 = vld [vmem:[%s1187_s3 + $0x64] ss:$8 sps:$4 sm:$0xff]   ;;  %v997_v23 = vld [vmem:[%s1187_s3 + $0x60] ss:$8 sps:$4 sm:$0xff]   ;;  %v998_v24 = vld [vmem:[%s1187_s3 + $0x74] ss:$8 sps:$4 sm:$0xff]  }
  0x6c   : > { %v1000_v25 = vld [vmem:[%s1187_s3 + $0x70] ss:$8 sps:$4 sm:$0xff]   ;;  %v746_v26 = vld [vmem:[%s1189_s5] sm:$0x1] }
  0x6d   : > { %747 = vst [vmem:[%s1083_s12 + $0x8] sm:$0x1] %v746_v26  ;;  %v945_v27 = vld [vmem:[%s1188_s4] ss:$0 sm:$0xff] }
  0x70   : > { %708 = vmatpush1.bf16.xpose.msra.mxu0 %v982_v11 }
  0x71   : > { %709 = vmatprep.subr.bf16.mxu0 %v983_v12 }
  0x78   : > { %710 = vmatpush1.bf16.xpose.msra.mxu0 %v985_v15 }
  0x79   : > { %711 = vmatprep.subr.bf16.mxu0 %v986_v16 }
  0x80   : > { %712 = vmatpush1.bf16.xpose.msra.mxu0 %v988_v17 }
  0x81   : > { %713 = vmatprep.subr.bf16.mxu0 %v989_v18 }
  0x88   : > { %714 = vmatpush1.bf16.xpose.msra.mxu0 %v991_v19 }
  0x89   : > { %715 = vmatprep.subr.bf16.mxu0 %v992_v20 }
  0x90   : > { %716 = vmatpush1.bf16.xpose.msra.mxu0 %v994_v21 }
  0x91   : > { %717 = vmatprep.subr.bf16.mxu0 %v995_v22 }
  0x98   : > { %718 = vmatpush1.bf16.xpose.msra.mxu0 %v997_v23 }
  0x99   : > { %719 = vmatprep.subr.bf16.mxu0 %v998_v24 }
  0xa0   : > { %720 = vmatpush1.bf16.xpose.msra.mxu0 %v1000_v25 }
  0xa7   : > { %738 = vmatmul.mubr.bf16.vlgmr.msra.gmra.mrb[0].mxu0 %v946_v13 }
 0x17a   : > { %v739_v28 = vpop.f32.mrb[0].mxu0 }
 0x17b   : > { %v740_v29 = vadd.f32 %v945_v27, %v739_v28  ;;  %v741_v30 = vpop.f32.mrb[1].mxu0 }
 0x17c   : > { %v742_v31 = vpop.f32.mrb[2].mxu0 }
 0x17d   : > { %745 = vst [vmem:[%s1083_s12 + $0x9] sm:$0xf] %v740_v29  ;;  %v743_v32 = vpop.f32.mrb[3].mxu0 }
 0x17e   : > { %1019 = dma.done.wait [#allocation2], 128 }
 0x17f   : > { %1020 = vsyncadd [#allocation2], 4294967168 }
 0x180 PF: > { %s22_s26 = sadd.s32 1, %s1023_s26  }
 0x181   : > { %p19_p9 = scmp.ge.s32.totalorder %s22_s26, 4  }
 0x183   :  { %21 = sbr.rel (!%p19_p9) target bundleno = 16 (0x10), region = 401 }
 0x18a   :  { %786 = vsyncmov [#allocation2] }
 0x18d   :  { %s787_s21 = vpop.sfrf %786 }
 0x18e   :  { %p965_p10 = scmp.ne.s32.totalorder %s787_s21, 0 }
 0x190   :  { %791 = shalt.err (%p965_p10)  }

</bundles_post_ra>
